<compile_context>
chip_gen: v6e
topology: v6e:2x2x1
jax: 0.10.0
libtpu: 0.0.40
codegen_flags: <defaults>
</compile_context>

<pallas_src>
import functools

import jax
import jax.numpy as jnp
from jax.experimental import pallas as pl
from jax.experimental.pallas import tpu as pltpu

_MIB = 1024 * 1024


def _round_up(x, m):
    return ((x + m - 1) // m) * m


@functools.lru_cache(maxsize=1)
def _tpu_config():
    """Per-TPU-generation defaults (batch tile, scoped VMEM, dev pipeline)."""
    kind = ""
    try:
        kind = jax.devices()[0].device_kind.lower()
    except Exception:
        pass
    if "v7" in kind:
        # 64 MiB VMEM/TC; each of the 2 TCs holds its own resident a_embed
        # copy under the "parallel" grid axis -> keep budgets tight.
        return {"max_block_b": 512, "vmem_limit": 48 * _MIB,
                "dev_tile_budget": 24 * _MIB, "dev_buffers": 2}
    if "v6" in kind:
        # 128 MiB VMEM: big tiles amortize the ~0.35us/step grid overhead.
        return {"max_block_b": 1024, "vmem_limit": 96 * _MIB,
                "dev_tile_budget": 48 * _MIB, "dev_buffers": 2}
    if "v5 lite" in kind or "v5lite" in kind or "v5e" in kind:
        # Lowest HBM BW: deepen the dev-stream pipeline; ample VMEM headroom.
        return {"max_block_b": 1024, "vmem_limit": 64 * _MIB,
                "dev_tile_budget": 48 * _MIB, "dev_buffers": 3}
    # Unknown generation: conservative (v7x-safe) defaults.
    return {"max_block_b": 512, "vmem_limit": 48 * _MIB,
            "dev_tile_budget": 24 * _MIB, "dev_buffers": 2}


def _pick_batch_tile(batch, n_devs_pad, block_b, cfg, dev_buffers):
    """Batch tile: multiple of 16 (bf16 sublanes), bounded by the dev-stream
    VMEM budget (dev_buffers x tb x n_devs_pad x 2B)."""
    if block_b is None:
        per_row = n_devs_pad * 2 * dev_buffers
        cap = max(16, cfg["dev_tile_budget"] // per_row)
        block_b = min(cfg["max_block_b"], cap)
    tb = min(int(block_b), _round_up(batch, 16))
    tb = max(16, (tb // 16) * 16)
    return tb


# ----------------------------------------------------------------------------
# Pallas kernel (one batch tile of tb rows):
#   asum  = dev @ [a_embed | 1]            one MXU matmul -> bag sum + count
#   avec  = asum[:, :F] / max(cnt, 1)      (EmbeddingBag 'mean'; empty bag -> 0)
#   prod  = uvec * (ivec + avec)
#   out   = bias_row + ones(1,F) . prod^T  lane-dense (1, tb) score row
# ----------------------------------------------------------------------------
def gamenet_kernel(dev_ref, uvec_ref, ivec_ref, bias_ref, aw_ref, out_ref):
    f = uvec_ref.shape[-1]

    # Single MXU matmul: cols [:F] = bag sum, col F = bag count (ones column).
    # The 0/1 bf16 -> f32 widening feeds only this matmul (not bound & reused),
    # so no (tb, n_devs) f32 temporary is materialized.
    asum = jnp.dot(dev_ref[...].astype(jnp.float32), aw_ref[...],
                   preferred_element_type=jnp.float32)            # (tb, F+1)
    cnt = asum[:, f:f + 1]                                        # (tb, 1) exact
    avec = jnp.where(cnt > 0.0, asum[:, :f] / jnp.maximum(cnt, 1.0), 0.0)

    prod = uvec_ref[...] * (ivec_ref[...] + avec)                 # (tb, F)

    # Row-wise dot product emitted directly in lane-dense (1, tb) form:
    # ones(1,F) contracted with prod on F (== ones @ prod^T on the MXU), so
    # the feature reduction and the sublane->lane relayout happen in one op.
    dot_row = jax.lax.dot_general(
        jnp.ones((1, f), jnp.float32), prod,
        dimension_numbers=(((1,), (1,)), ((), ())),
        preferred_element_type=jnp.float32)                       # (1, tb)

    out_ref[0] = bias_ref[0] + dot_row                            # (1, tb)


@functools.partial(
    jax.jit,
    static_argnames=("tb", "n_devs_pad", "vmem_limit_bytes", "dev_buffers"))
def _gamenet_forward_impl(params, dev_multihot, users, items, *, tb,
                          n_devs_pad, vmem_limit_bytes, dev_buffers):
    B = users.shape[0]
    F = params["u_embed"].shape[1]
    n_devs = dev_multihot.shape[1]

    # Embedding-row gathers stay in XLA (see TODO at top for fused gather).
    uvec = params["u_embed"][users]                               # (B, F) f32
    ivec = params["i_embed"][items]                               # (B, F) f32
    bias = params["u_bias"][users] + params["i_bias"][items]      # (B, 1) f32

    # Multi-hot rows are exactly 0/1 -> bf16 is exact and halves dev bytes.
    dev_table = (dev_multihot if dev_multihot.dtype == jnp.bfloat16
                 else dev_multihot.astype(jnp.bfloat16))
    dev_rows = dev_table[items]                                   # (B, n_devs)

    # a_embed augmented with a ones column: one matmul gives sum AND count.
    aw_aug = jnp.concatenate(
        [params["a_embed"].astype(jnp.float32),
         jnp.ones((n_devs, 1), jnp.float32)], axis=-1)            # (n_devs, F+1)

    # Pad the dev vocabulary to a lane-aligned multiple of 128 (zeros are
    # never selected, so results are unchanged).
    if n_devs_pad != n_devs:
        dev_rows = jnp.pad(dev_rows, ((0, 0), (0, n_devs_pad - n_devs)))
        aw_aug = jnp.pad(aw_aug, ((0, n_devs_pad - n_devs), (0, 0)))

    # Pad the batch to a whole number of tiles (zero rows score exactly 0).
    b_pad = _round_up(B, tb)
    pad = b_pad - B
    if pad:
        uvec = jnp.pad(uvec, ((0, pad), (0, 0)))
        ivec = jnp.pad(ivec, ((0, pad), (0, 0)))
        bias = jnp.pad(bias, ((0, pad), (0, 0)))
        dev_rows = jnp.pad(dev_rows, ((0, pad), (0, 0)))
    n_tiles = b_pad // tb

    # Lane-dense bias rows matching the lane-dense output layout.
    bias_rows = bias.reshape(n_tiles, 1, tb)

    dev_kwargs = {}
    if dev_buffers != 2:  # default pipeline depth is 2
        dev_kwargs["pipeline_mode"] = pl.Buffered(dev_buffers)
    dev_spec = pl.BlockSpec((tb, n_devs_pad), lambda i: (i, 0), **dev_kwargs)

    score_rows = pl.pallas_call(
        gamenet_kernel,
        out_shape=jax.ShapeDtypeStruct((n_tiles, 1, tb), jnp.float32),
        grid=(n_tiles,),
        in_specs=[
            dev_spec,                                             # dev multi-hot
            pl.BlockSpec((tb, F), lambda i: (i, 0)),              # uvec
            pl.BlockSpec((tb, F), lambda i: (i, 0)),              # ivec
            pl.BlockSpec((1, 1, tb), lambda i: (i, 0, 0)),        # bias (lane-dense)
            # a_embed (+ones column): grid-invariant -> single VMEM buffer.
            pl.BlockSpec((n_devs_pad, F + 1), lambda i: (0, 0),
                         pipeline_mode=pl.Buffered(1)),
        ],
        out_specs=pl.BlockSpec((1, 1, tb), lambda i: (i, 0, 0)),
        compiler_params=pltpu.CompilerParams(
            dimension_semantics=("parallel",),
            vmem_limit_bytes=vmem_limit_bytes,
        ),
    )(dev_rows, uvec, ivec, bias_rows, aw_aug)

    return score_rows.reshape(b_pad)[:B]                          # (B,)


def gamenet_forward(params, dev_multihot, users, items, *, block_b=None,
                    vmem_limit_bytes=None, dev_buffers=None):
    """GameNet.forward: embedding gathers in XLA + tiled Pallas hot path."""
    cfg = _tpu_config()
    if dev_buffers is None:
        dev_buffers = cfg["dev_buffers"]
    if vmem_limit_bytes is None:
        vmem_limit_bytes = cfg["vmem_limit"]
    n_devs = dev_multihot.shape[1]
    n_devs_pad = _round_up(max(n_devs, 1), 128)
    tb = _pick_batch_tile(users.shape[0], n_devs_pad, block_b, cfg, dev_buffers)
    return _gamenet_forward_impl(
        params, dev_multihot, users, items,
        tb=int(tb), n_devs_pad=int(n_devs_pad),
        vmem_limit_bytes=int(vmem_limit_bytes), dev_buffers=int(dev_buffers))


def gamenet_forward_ref(params, dev_multihot, users, items):
    """Pure-JAX reference of GameNet.forward (use_genres is always False)."""
    uvec = params["u_embed"][users]
    ivec = params["i_embed"][items]
    ub = params["u_bias"][users][:, 0]
    ib = params["i_bias"][items][:, 0]
    rows = dev_multihot[items].astype(jnp.float32)
    cnt = rows.sum(-1, keepdims=True)
    avec = jnp.where(cnt > 0.0,
                     (rows @ params["a_embed"]) / jnp.maximum(cnt, 1.0), 0.0)
    ivec = ivec + avec
    return ib + ub + jnp.sum(uvec * ivec, axis=-1)


def init_params(key, n_users, n_items, n_devs, n_feats):
    """Deterministic init matching GameNet.__init__ (N(0,1) * 0.05 scaling).

    Note: the .square() calls in the PyTorch __init__ are not in-place, so the
    biases end up as N(0,1) * 0.05, same as the embeddings.
    """
    k1, k2, k3, k4, k5 = jax.random.split(key, 5)
    return {
        "u_bias": jax.random.normal(k1, (n_users, 1), jnp.float32) * 0.05,
        "i_bias": jax.random.normal(k2, (n_items, 1), jnp.float32) * 0.05,
        "u_embed": jax.random.normal(k3, (n_users, n_feats), jnp.float32) * 0.05,
        "i_embed": jax.random.normal(k4, (n_items, n_feats), jnp.float32) * 0.05,
        "a_embed": jax.random.normal(k5, (n_devs, n_feats), jnp.float32) * 0.05,
    }


if __name__ == "__main__":
    n_users, n_items, n_devs, n_feats, batch = 16, 12, 8, 32, 20

    key = jax.random.PRNGKey(0)
    kp, kd, ku, ki = jax.random.split(key, 4)

    params = init_params(kp, n_users, n_items, n_devs, n_feats)
    # Synthetic dev_mat (CSR in the original) as a dense 0/1 multi-hot matrix.
    dev_multihot = jax.random.bernoulli(kd, 0.4, (n_items, n_devs)).astype(jnp.float32)

    users = jax.random.randint(ku, (batch,), 0, n_users)
    items = jax.random.randint(ki, (batch,), 0, n_items)

    ref = gamenet_forward_ref(params, dev_multihot, users, items)

    # Small explicit tile exercises the multi-tile grid + batch-padding path.
    score = gamenet_forward(params, dev_multihot, users, items, block_b=16)
    jax.block_until_ready(score)
    assert score.shape == (batch,)
    assert jnp.allclose(score, ref, atol=1e-5, rtol=1e-5)

    # Auto-tuned (per-TPU-generation) configuration.
    score2 = gamenet_forward(params, dev_multihot, users, items)
    jax.block_until_ready(score2)
    assert jnp.allclose(score2, ref, atol=1e-5, rtol=1e-5)

    print("KERNEL_OK")
</pallas_src>

<mosaic_0001>
module attributes {stable_mosaic.version = 11 : i64} {
  func.func @gamenet_kernel(%arg0: i32, %arg1: memref<16x128xbf16, #tpu.memory_space<vmem>>, %arg2: memref<16x32xf32, #tpu.memory_space<vmem>>, %arg3: memref<16x32xf32, #tpu.memory_space<vmem>>, %arg4: memref<1x1x16xf32, #tpu.memory_space<vmem>>, %arg5: memref<128x33xf32, #tpu.memory_space<vmem>>, %arg6: memref<1x1x16xf32, #tpu.memory_space<vmem>>) attributes {dimension_semantics = [#tpu.dimension_semantics<parallel>], iteration_bounds = array<i64: 2>, scalar_prefetch = 0 : i64, scratch_operands = 0 : i64, tpu.core_type = #tpu.core_type<tc>, window_params = [{transform_indices = @transform_0, window_bounds = array<i64: 16, 128>}, {transform_indices = @transform_1, window_bounds = array<i64: 16, 32>}, {transform_indices = @transform_2, window_bounds = array<i64: 16, 32>}, {transform_indices = @transform_3, window_bounds = array<i64: 1, 1, 16>}, {pipeline_mode = #tpu.pipeline_mode<synchronous>, transform_indices = @transform_4, window_bounds = array<i64: 128, 33>}, {transform_indices = @transform_5, window_bounds = array<i64: 1, 1, 16>}]} {
    %c0 = arith.constant 0 : index
    %c0_0 = arith.constant 0 : index
    %0 = vector.load %arg1[%c0, %c0_0] : memref<16x128xbf16, #tpu.memory_space<vmem>>, vector<16x128xbf16>
    %1 = arith.extf %0 : vector<16x128xbf16> to vector<16x128xf32>
    %c0_1 = arith.constant 0 : index
    %c0_2 = arith.constant 0 : index
    %2 = vector.load %arg5[%c0_1, %c0_2] : memref<128x33xf32, #tpu.memory_space<vmem>>, vector<128x33xf32>
    %cst = arith.constant dense<0.000000e+00> : vector<16x33xf32>
    %3 = tpu.matmul %1, %2, %cst {dimension_numbers = #tpu.dot_dimension_numbers<[1], [0], [0], [1], [0, 0, 1, 1], [], []>} : vector<16x128xf32>, vector<128x33xf32>, vector<16x33xf32> -> vector<16x33xf32>
    %4 = vector.extract_strided_slice %3 {offsets = [0, 32], sizes = [16, 1], strides = [1, 1]} : vector<16x33xf32> to vector<16x1xf32>
    %cst_3 = arith.constant 0.000000e+00 : f32
    %5 = vector.broadcast %cst_3 : f32 to vector<16x1xf32>
    %6 = arith.cmpf ogt, %4, %5 : vector<16x1xf32>
    %7 = vector.extract_strided_slice %3 {offsets = [0, 0], sizes = [16, 32], strides = [1, 1]} : vector<16x33xf32> to vector<16x32xf32>
    %cst_4 = arith.constant 1.000000e+00 : f32
    %8 = vector.broadcast %cst_4 : f32 to vector<16x1xf32>
    %9 = arith.maximumf %4, %8 : vector<16x1xf32>
    %10 = vector.broadcast %9 : vector<16x1xf32> to vector<16x32xf32>
    %11 = arith.divf %7, %10 : vector<16x32xf32>
    %cst_5 = arith.constant 0.000000e+00 : f32
    %12 = vector.shape_cast %6 : vector<16x1xi1> to vector<16x1xi1>
    %13 = vector.broadcast %12 : vector<16x1xi1> to vector<16x32xi1>
    %14 = vector.broadcast %cst_5 : f32 to vector<16x32xf32>
    %15 = arith.select %13, %11, %14 : vector<16x32xi1>, vector<16x32xf32>
    %c0_6 = arith.constant 0 : index
    %c0_7 = arith.constant 0 : index
    %16 = vector.load %arg2[%c0_6, %c0_7] : memref<16x32xf32, #tpu.memory_space<vmem>>, vector<16x32xf32>
    %c0_8 = arith.constant 0 : index
    %c0_9 = arith.constant 0 : index
    %17 = vector.load %arg3[%c0_8, %c0_9] : memref<16x32xf32, #tpu.memory_space<vmem>>, vector<16x32xf32>
    %18 = arith.addf %17, %15 : vector<16x32xf32>
    %19 = arith.mulf %16, %18 : vector<16x32xf32>
    %cst_10 = arith.constant 1.000000e+00 : f32
    %20 = vector.broadcast %cst_10 : f32 to vector<1x32xf32>
    %cst_11 = arith.constant dense<0.000000e+00> : vector<1x16xf32>
    %21 = tpu.matmul %20, %19, %cst_11 {dimension_numbers = #tpu.dot_dimension_numbers<[1], [1], [0], [0], [0, 0, 1, 0], [], []>} : vector<1x32xf32>, vector<16x32xf32>, vector<1x16xf32> -> vector<1x16xf32>
    %c0_12 = arith.constant 0 : index
    %c0_13 = arith.constant 0 : index
    %c0_14 = arith.constant 0 : index
    %22 = vector.load %arg4[%c0_12, %c0_13, %c0_14] : memref<1x1x16xf32, #tpu.memory_space<vmem>>, vector<1x1x16xf32>
    %23 = vector.shape_cast %22 : vector<1x1x16xf32> to vector<1x16xf32>
    %24 = arith.addf %23, %21 : vector<1x16xf32>
    %c0_15 = arith.constant 0 : index
    %c0_16 = arith.constant 0 : index
    %c0_17 = arith.constant 0 : index
    %25 = vector.load %arg6[%c0_15, %c0_16, %c0_17] : memref<1x1x16xf32, #tpu.memory_space<vmem>>, vector<1x1x16xf32>
    %26 = vector.shape_cast %25 : vector<1x1x16xf32> to vector<1x16xf32>
    %27 = vector.shape_cast %24 : vector<1x16xf32> to vector<1x1x16xf32>
    tpu.vector_store %arg6[%c0_15, %c0_16, %c0_17], %27 {strides = array<i32>} : memref<1x1x16xf32, #tpu.memory_space<vmem>>, vector<1x1x16xf32>,
    return
  }
  func.func @transform_0(%arg0: i32) -> (i32, i32) {
    %c0_i32 = arith.constant 0 : i32
    %c0_i32_0 = arith.constant 0 : i32
    return %arg0, %c0_i32 : i32, i32
  }
  func.func @transform_1(%arg0: i32) -> (i32, i32) {
    %c0_i32 = arith.constant 0 : i32
    %c0_i32_0 = arith.constant 0 : i32
    return %arg0, %c0_i32 : i32, i32
  }
  func.func @transform_2(%arg0: i32) -> (i32, i32) {
    %c0_i32 = arith.constant 0 : i32
    %c0_i32_0 = arith.constant 0 : i32
    return %arg0, %c0_i32 : i32, i32
  }
  func.func @transform_3(%arg0: i32) -> (i32, i32, i32) {
    %c0_i32 = arith.constant 0 : i32
    %c0_i32_0 = arith.constant 0 : i32
    %c0_i32_1 = arith.constant 0 : i32
    return %arg0, %c0_i32, %c0_i32_0 : i32, i32, i32
  }
  func.func @transform_4(%arg0: i32) -> (i32, i32) {
    %c0_i32 = arith.constant 0 : i32
    %c0_i32_0 = arith.constant 0 : i32
    %c0_i32_1 = arith.constant 0 : i32
    return %c0_i32, %c0_i32_0 : i32, i32
  }
  func.func @transform_5(%arg0: i32) -> (i32, i32, i32) {
    %c0_i32 = arith.constant 0 : i32
    %c0_i32_0 = arith.constant 0 : i32
    %c0_i32_1 = arith.constant 0 : i32
    return %arg0, %c0_i32, %c0_i32_0 : i32, i32, i32
  }
}

</mosaic_0001>

<bundles_post_ra>
// kernel: _gamenet_forward_impl.1
= control target key start
LH: loop header
LB: loop body
LE: loop exit
PB: predicated region body
PF: predicated region fallthrough
CT: control target
= control target key end

     0   :  { %s723_s18 = smov 0   ;;  %s806_s0 = inlined_call_operand.vmem [shape: bf16[32,128], index: 0, kind: input, shape index: {}]   ;;  %s807_s1 = inlined_call_operand.vmem [shape: f32[32,32], index: 1, kind: input, shape index: {}]   ;;  %s808_s2 = inlined_call_operand.vmem [shape: f32[32,32], index: 2, kind: input, shape index: {}]   ;;  %s809_s3 = inlined_call_operand.vmem [shape: f32[2,1,16], index: 3, kind: input, shape index: {}]   ;;  %s810_s4 = inlined_call_operand.vmem [shape: f32[128,33], index: 4, kind: input, shape index: {}]   ;;  %s811_s5 = inlined_call_operand.vmem [shape: f32[2,1,16], index: 5, kind: output, shape index: {}]  }
   0x1 LB: > { %s729_s19 = sadd.s32 4294967295, %s686_s18   ;;  %p582_p0 = scmp.ge.s32.totalorder %s686_s18, 1  ;;  %s686_s18 = sphi %s723_s18, %s15_s18  }
   0x2   : > { %p218_p1 = scmp.lt.s32.totalorder %s686_s18, 3 }
   0x4   : > { %p219_p2 = pnand %p582_p0, %p218_p1 }
   0x5   : > { %s583_s24 = sshll.u32 (!%p219_p2), %s729_s19, 1  ;;  %p275_p4 = scmp.lt.s32.totalorder (!%p219_p2), %s729_s19, 1 }
   0x6   : > { %222 = sbr.rel (%p219_p2) target bundleno = 587 (0x24b), region = 40  ;;  %p258_p3 = scmp.lt.s32.totalorder (!%p219_p2), %s583_s24, 3 }
   0xb   : > { %v300_v0 = vld [vmem:[%s810_s4 + $0x78] sm:$0xff]  ;;  %v299_v1 = vld [vmem:[%s810_s4 + $0x70] sm:$0xff]  ;;  %v298_v2 = vld [vmem:[%s810_s4 + $0x68] sm:$0xff]  ;;  %s813_s24 = smov (!%p258_p3, %s583_s24), 3  ;;  %v688_v19 = vmov 32   ;;  %v689_v23 = vmov 0  }
   0xc   : > { %619 = vmatprep.subr.mxu0 %v300_v0  ;;  %v297_v3 = vld [vmem:[%s810_s4 + $0x60] sm:$0xff]  ;;  %s584_s29 = sshll.u32 %s813_s24, 2  ;;  %v296_v4 = vld [vmem:[%s810_s4 + $0x58] sm:$0xff]  ;;  %v295_v6 = vld [vmem:[%s810_s4 + $0x50] sm:$0xff]  ;;  %675 = vset.pattern.permute.xlu1 %v688_v19  ;;  %v690_v27 = vmov 0.0   ;;  %vm691_vm2 = vmmov 0  }
   0xd   : > { %620 = vmatpush3.msra.mxu0 %v300_v0  ;;  %s261_s9 = scalar_lea.vmem %s806_s0, %s584_s29  ;;  %v294_v8 = vld [vmem:[%s810_s4 + $0x48] sm:$0xff]  ;;  %v293_v9 = vld [vmem:[%s810_s4 + $0x40] sm:$0xff]  ;;  %v292_v10 = vld [vmem:[%s810_s4 + $0x38] sm:$0xff]  ;;  %674 = vset.pattern.permute.xlu0 %v688_v19  ;;  %s586_s10 = sshll.u32 %s813_s24, 3  ;;  %vm414_vm4 = vcmask 261120   ;;  %v692_v46 = vmov 1.0  }
   0xe   : > { %621 = vmatprep.subr.mxu0 %v299_v1  ;;  %v595_v5 = vld [vmem:[%s261_s9] sm:$0xff]   ;;  %v291_v11 = vld [vmem:[%s810_s4 + $0x30] sm:$0xff]  ;;  %v290_v12 = vld [vmem:[%s810_s4 + $0x28] sm:$0xff]  ;;  %654 = vmatprep.subr.mxu1 %v690_v27  ;;  %s273_s13 = scalar_lea.vmem %s808_s2, %s586_s10  ;;  %s267_s16 = scalar_lea.vmem %s807_s1, %s586_s10  ;;  %vm496_vm6 = vcmask 122880  }
   0xf   : > { %622 = vmatpush3.msra.mxu0 %v299_v1  ;;  %v596_v7 = vunpack.c.l.bf16 %v595_v5  ;;  %v289_v13 = vld [vmem:[%s810_s4 + $0x20] sm:$0xff]  ;;  %v288_v14 = vld [vmem:[%s810_s4 + $0x18] sm:$0xff]  ;;  %v287_v15 = vld [vmem:[%s810_s4 + $0x10] sm:$0xff]  ;;  %v597_v18 = vunpack.c.h.bf16 %v595_v5  ;;  %658 = vmatprep.mubr.msk.f32.mxu1 %vm691_vm2, %v690_v27  ;;  %s815_s19 = smov (!%p275_p4, %s729_s19), 1 }
  0x10   : > { %623 = vmatprep.subr.mxu0 %v298_v2  ;;  %v286_v16 = vld [vmem:[%s810_s4 + $0x8] sm:$0xff]  ;;  %v285_v17 = vld [vmem:[%s810_s4] sm:$0xff]  ;;  %s277_s20 = scalar_lea.vmem %s809_s3, %s815_s19  ;;  %s280_s23 = scalar_lea.vmem %s811_s5, %s815_s19 }
  0x11   : > { %624 = vmatpush3.msra.mxu0 %v298_v2  ;;  %651 = vmatprep.mubr.f32.mxu0 %v596_v7  ;;  %v409_v33 = vld [vmem:[%s273_s13 + $0x8] sm:$0xff]  ;;  %v408_v40 = vld [vmem:[%s273_s13] sm:$0xff] }
  0x12   : > { %625 = vmatprep.subr.mxu0 %v297_v3  ;;  %v407_v36 = vld [vmem:[%s267_s16 + $0x8] sm:$0xff]  ;;  %v406_v42 = vld [vmem:[%s267_s16] sm:$0xff] }
  0x13   : > { %626 = vmatpush3.msra.mxu0 %v297_v3  ;;  %v494_v47 = vld [vmem:[%s277_s20] sm:$0x1] }
  0x14   : > { %627 = vmatprep.subr.mxu0 %v296_v4 }
  0x15   : > { %628 = vmatpush3.msra.mxu0 %v296_v4 }
  0x16   : > { %629 = vmatprep.subr.mxu0 %v295_v6 }
  0x17   : > { %630 = vmatpush3.msra.mxu0 %v295_v6 }
  0x18   : > { %631 = vmatprep.subr.mxu0 %v294_v8 }
  0x19   : > { %632 = vmatpush3.msra.mxu0 %v294_v8 }
  0x1a   : > { %633 = vmatprep.subr.mxu0 %v293_v9 }
  0x1b   : > { %634 = vmatpush3.msra.mxu0 %v293_v9 }
  0x1c   : > { %635 = vmatprep.subr.mxu0 %v292_v10 }
  0x1d   : > { %636 = vmatpush3.msra.mxu0 %v292_v10 }
  0x1e   : > { %637 = vmatprep.subr.mxu0 %v291_v11 }
  0x1f   : > { %638 = vmatpush3.msra.mxu0 %v291_v11 }
  0x20   : > { %639 = vmatprep.subr.mxu0 %v290_v12 }
  0x21   : > { %640 = vmatpush3.msra.mxu0 %v290_v12 }
  0x22   : > { %641 = vmatprep.subr.mxu0 %v289_v13 }
  0x23   : > { %642 = vmatpush3.msra.mxu0 %v289_v13 }
  0x24   : > { %643 = vmatprep.subr.mxu0 %v288_v14 }
  0x25   : > { %644 = vmatpush3.msra.mxu0 %v288_v14 }
  0x26   : > { %645 = vmatprep.subr.mxu0 %v287_v15 }
  0x27   : > { %646 = vmatpush3.msra.mxu0 %v287_v15 }
  0x28   : > { %647 = vmatprep.subr.mxu0 %v286_v16 }
  0x29   : > { %648 = vmatpush3.msra.mxu0 %v286_v16 }
  0x2a   : > { %649 = vmatprep.subr.mxu0 %v285_v17 }
  0x2b   : > { %650 = vmatpush3.msra.mxu0 %v285_v17 }
  0x2c   : > { %652 = vmatmul.mubr.f32.vlgmr.msra.gmra.mxu0 %v597_v18 }
  0xec   : > { %v653_v20 = vpop.f32.mrf.mxu0 }
  0xed   : > { %v379_v21 = vmax.f32 %v653_v20, 1.0  ;;  %vm377_vm0 = vcmp.gt.f32.partialorder %v653_v20, 0.0 }
  0xee   : > { %v367_v22 = vpop.f32.mrf.mxu0  ;;  %v395_v24 = vsel %vm377_vm0, 1, %v689_v23 }
  0xef   : > { %vm376_vm1 = vcmp.gt.f32.partialorder %v367_v22, 0.0  ;;  %387 = vperm.xlu0 %674, %v379_v21   ;;  %400 = vperm.xlu1 %675, %v395_v24   ;;  %v378_v25 = vmax.f32 %v367_v22, 1.0 }
  0xf0   : > { %v394_v26 = vsel %vm376_vm1, 1, %v689_v23 }
  0xf3   : > { %382 = vperm.xlu0 %674, %v378_v25   ;;  %397 = vperm.xlu1 %675, %v394_v26  }
 0x16a   : > { %v388_v28 = vpop.permute.xlu0 %387  ;;  %v401_v30 = vpop.permute.xlu1 %400 }
 0x16b   : > { %676 = vrcp.f32 %v388_v28  ;;  %vm403_vm3 = vcmp.eq.s32.totalorder %v401_v30, 1 }
 0x16e   : > { %v383_v29 = vpop.permute.xlu0 %382  ;;  %v398_v35 = vpop.permute.xlu1 %397 }
 0x16f   : > { %678 = vrcp.f32 %v383_v29  ;;  %vm402_vm5 = vcmp.eq.s32.totalorder %v398_v35, 1 }
 0x178   : > { %v677_v31 = vpop.eup %676 }
 0x179   : > { %v393_v32 = vmul.f32 %v677_v31, %v653_v20 }
 0x17b   : > { %v405_v34 = vsel %vm403_vm3, %v393_v32, 0.0 }
 0x17c   : > { %v679_v37 = vpop.eup %678  ;;  %v411_v38 = vadd.f32 %v409_v33, %v405_v34 }
 0x17d   : > { %v391_v39 = vmul.f32 %v679_v37, %v367_v22 }
 0x17e   : > { %v413_v41 = vmul.f32 %v411_v38, %v407_v36 }
 0x17f   : > { %v404_v43 = vsel %vm402_vm5, %v391_v39, 0.0 }
 0x180   : > { %v410_v44 = vadd.f32 %v408_v40, %v404_v43  ;;  %655 = vmatpush3.xpose.msk.msra.mxu1 %vm414_vm4, %v413_v41 }
 0x181   : > { %656 = vmatprep.subr.mxu1 %v690_v27 }
 0x182   : > { %v412_v45 = vmul.f32 %v410_v44, %v406_v42 }
 0x184   : > { %657 = vmatpush3.xpose.msk.msra.mxu1 %vm414_vm4, %v412_v45 }
 0x187   : > { %659 = vmatmul.mubr.msk.f32.vlgmr.msra.gmra.mxu1 %vm414_vm4, %v692_v46 }
 0x247   : > { %v490_v48 = vpop.f32.mrf.mxu1 }
 0x248   : > { %v495_v49 = vadd.f32 %v494_v47, %v490_v48 }
 0x249   : > { %v660_v50 = vpop.f32.mrf.mxu1 }
 0x24a   : > { %497 = vst.msk [vmem:[%s280_s23] sm:$0x1] %vm496_vm6, %v495_v49 }
 0x24b PF: > { %s15_s18 = sadd.s32 1, %s686_s18  }
 0x24c   : > { %p12_p5 = scmp.ge.s32.totalorder %s15_s18, 4  }
 0x24e   :  { %14 = sbr.rel (!%p12_p5) target bundleno = 1 (0x1), region = 79 }

</bundles_post_ra>
